<compile_context>
chip_gen: v7x
topology: tpu7x:2x2x1
jax: 0.10.0
libtpu: 0.0.40
codegen_flags: <defaults>
</compile_context>

<pallas_src>
import functools

import jax
import jax.numpy as jnp
from jax.experimental import pallas as pl
from jax.experimental.pallas import tpu as pltpu

SMOOTH = 1e-05


def _soft_iou_kernel(x_ref, t_ref, inter_ref, sq_ref, inter_acc, sq_acc, *,
                     logit, n_valid, tk, k_per, kt, mask_tail):
    """Grid = (spatial splits, row blocks, spatial blocks per split).

    Each step streams a (TR, TK) tile of logits/targets, accumulating
    lane-wide partial sums into narrow (TR, <=128) VMEM accumulators; the last
    spatial step of a (split, row-block) pair does the small cross-lane reduce
    and writes per-row partial sums (intersection, sum-of-squares)."""
    s = pl.program_id(0)
    k = pl.program_id(2)

    @pl.when(k == 0)
    def _init():
        inter_acc[...] = jnp.zeros_like(inter_acc)
        sq_acc[...] = jnp.zeros_like(sq_acc)

    gw = 128 if tk >= 128 else tk       # column-group (lane) width
    n_groups = tk // gw                 # tk is a multiple of gw by construction

    def accumulate(masked):
        if masked:
            col_base = (s * k_per + k) * tk  # global column offset of this tile
        for j in range(n_groups):
            x = x_ref[:, j * gw:(j + 1) * gw].astype(jnp.float32)
            t = t_ref[:, j * gw:(j + 1) * gw].astype(jnp.float32)
            if logit:
                x = jax.nn.sigmoid(x)
            if masked:
                col = col_base + j * gw + jax.lax.broadcasted_iota(
                    jnp.int32, x.shape, 1)
                ok = col < n_valid
                x = jnp.where(ok, x, 0.0)
                t = jnp.where(ok, t, 0.0)
            # Pure VALU path in the hot loop; accumulators stay lane-wide.
            inter_acc[...] += x * t
            sq_acc[...] += x * x + t * t

    if mask_tail:
        is_tail = (s * k_per + k) == (kt - 1)

        @pl.when(jnp.logical_not(is_tail))
        def _body():
            accumulate(False)

        @pl.when(is_tail)
        def _tail():
            accumulate(True)
    else:
        accumulate(False)

    @pl.when(k == k_per - 1)
    def _finalize():
        inter_ref[0] = jnp.sum(inter_acc[...], axis=-1, keepdims=True)
        sq_ref[0] = jnp.sum(sq_acc[...], axis=-1, keepdims=True)


def soft_iou_loss(inp, target, *, logit=True, class_weights=None, log=False,
                  tr_max=128, tk_max=4096):
    """JAX/Pallas equivalent of SoftIoULoss.forward.

    inp, target: (B, C, H, W) arrays (any float/int dtype; streamed natively).
    Returns a (1,) loss, or a scalar -log(mIoU) when log=True.
    """
    assert inp.shape == target.shape and inp.ndim == 4
    B, C, H, W = inp.shape
    R = B * C
    N = H * W

    x2d = inp.reshape(R, N)       # free (contiguous) reshape, no dtype change
    t2d = target.reshape(R, N)

    # Row tile: whole R when it is small (block == full dim is always legal,
    # no padding needed), else 128 rows (a multiple of every dtype's sublane
    # packing); the last row block may be partial.
    TR = R if R <= tr_max else tr_max
    # Spatial tile: a multiple of 128 lanes, or the whole (possibly ragged)
    # axis when it is small; never larger than the array, so no jnp.pad copy.
    if N >= tk_max:
        TK = tk_max
    elif N % 128 == 0 or N <= 128:
        TK = N
    else:
        TK = (N // 128) * 128
    RB = pl.cdiv(R, TR)
    KT = pl.cdiv(N, TK)
    # v7x: if the row axis has only one block, split the spatial range across
    # the two TensorCores (only when it splits evenly; no-op split elsewhere).
    NS = 2 if (RB == 1 and KT >= 2 and KT % 2 == 0) else 1
    k_per = KT // NS
    mask_tail = (N % TK) != 0
    acc_w = 128 if TK >= 128 else TK

    kernel = functools.partial(
        _soft_iou_kernel, logit=logit, n_valid=N, tk=TK, k_per=k_per, kt=KT,
        mask_tail=mask_tail)

    out_rows = RB * TR
    inter_out, sq_out = pl.pallas_call(
        kernel,
        out_shape=(jax.ShapeDtypeStruct((NS, out_rows, 1), jnp.float32),
                   jax.ShapeDtypeStruct((NS, out_rows, 1), jnp.float32)),
        grid_spec=pltpu.PrefetchScalarGridSpec(
            num_scalar_prefetch=0,
            grid=(NS, RB, k_per),                      # reduction axis last
            in_specs=[
                pl.BlockSpec((TR, TK), lambda s, i, k: (i, s * k_per + k)),
                pl.BlockSpec((TR, TK), lambda s, i, k: (i, s * k_per + k)),
            ],
            out_specs=[
                pl.BlockSpec((1, TR, 1), lambda s, i, k: (s, i, 0)),
                pl.BlockSpec((1, TR, 1), lambda s, i, k: (s, i, 0)),
            ],
            scratch_shapes=[
                pltpu.VMEM((TR, acc_w), jnp.float32),  # sum(x * t), lane-wide
                pltpu.VMEM((TR, acc_w), jnp.float32),  # sum(x*x + t*t)
            ],
        ),
        compiler_params=pltpu.CompilerParams(
            dimension_semantics=("parallel", "parallel", "arbitrary"),
        ),
    )(x2d, t2d)

    # Tiny nonlinear epilogue in plain JAX (O(B*C) work).
    inter = jnp.sum(inter_out[:, :R, 0], axis=0)          # (R,)
    sq = jnp.sum(sq_out[:, :R, 0], axis=0)                 # (R,)
    union = sq - inter
    iou_bc = ((inter + SMOOTH) / (union + SMOOTH)).reshape(B, C)
    if class_weights is not None:
        iou_bc = iou_bc * jnp.asarray(class_weights, jnp.float32)
    miou = jnp.mean(jnp.mean(iou_bc, axis=1))

    # TODO(synk): the PyTorch module's host-side `assert 0 <= mIoU <= 1`
    # (device->host sync) is intentionally dropped to keep the fn jittable.

    if log:
        return -jnp.log(miou)
    return jnp.ones((1,), jnp.float32) - miou


def _reference(inp, target, *, logit=True, class_weights=None, log=False):
    x = inp.astype(jnp.float32)
    t = target.astype(jnp.float32)
    if logit:
        x = jax.nn.sigmoid(x)
    inter = jnp.sum(x * t, axis=(2, 3))
    union = jnp.sum(x * x, axis=(2, 3)) + jnp.sum(t * t, axis=(2, 3)) - inter
    iou = (inter + SMOOTH) / (union + SMOOTH)
    if class_weights is not None:
        iou = iou * jnp.asarray(class_weights, jnp.float32)
    miou = jnp.mean(jnp.mean(iou, axis=1))
    if log:
        return -jnp.log(miou)
    return jnp.ones((1,), jnp.float32) - miou


if __name__ == "__main__":
    key = jax.random.PRNGKey(0)
    ks = jax.random.split(key, 8)

    def check(got, want, name, atol=1e-4, rtol=1e-4):
        got = jax.block_until_ready(got)
        assert got.shape == want.shape, (name, got.shape, want.shape)
        assert jnp.allclose(got, want, atol=atol, rtol=rtol), (name, got, want)

    # 1) Small aligned case (B=2, C=4, 16x16), jitted.
    x1 = jax.random.normal(ks[0], (2, 4, 16, 16), jnp.float32)
    t1 = (jax.random.uniform(ks[1], (2, 4, 16, 16)) > 0.5).astype(jnp.float32)
    f = jax.jit(lambda a, b: soft_iou_loss(a, b, logit=True))
    check(f(x1, t1), _reference(x1, t1), "basic")

    # 2) Tiny ragged shapes: R=6 rows, N=49 (< one lane group), no padding.
    x2 = jax.random.normal(ks[2], (2, 3, 7, 7), jnp.float32)
    t2 = (jax.random.uniform(ks[3], (2, 3, 7, 7)) > 0.5).astype(jnp.float32)
    check(soft_iou_loss(x2, t2), _reference(x2, t2), "ragged-small")

    # 3) log variant (scalar) and class_weights.
    check(soft_iou_loss(x1, t1, log=True), _reference(x1, t1, log=True), "log")
    w = jnp.asarray([0.5, 1.0, 2.0, 0.25], jnp.float32)
    check(soft_iou_loss(x1, t1, class_weights=w),
          _reference(x1, t1, class_weights=w), "weights")

    # 4) Small B*C with larger spatial: exercises the 2-way spatial split
    #    (both v7x TensorCores) and the masked tail block (4900 % 4096 != 0).
    x4 = jax.random.normal(ks[4], (1, 2, 70, 70), jnp.float32)
    t4 = (jax.random.uniform(ks[5], (1, 2, 70, 70)) > 0.5).astype(jnp.float32)
    check(soft_iou_loss(x4, t4), _reference(x4, t4), "split+mask")

    # 5) Multiple row blocks with a ragged row tail + bf16 logits streamed
    #    without host-side upcast (R=144 -> blocks of 128, N=5184 -> masked).
    x5 = jax.random.normal(ks[6], (16, 9, 72, 72), jnp.float32).astype(jnp.bfloat16)
    t5 = (jax.random.uniform(ks[7], (16, 9, 72, 72)) > 0.5).astype(jnp.float32)
    check(soft_iou_loss(x5, t5), _reference(x5, t5), "rows+bf16",
          atol=5e-4, rtol=5e-4)

    print("KERNEL_OK")
</pallas_src>

<mosaic_0001>
module attributes {stable_mosaic.version = 11 : i64} {
  func.func @_soft_iou_kernel(%arg0: i32, %arg1: i32, %arg2: i32, %arg3: memref<8x256xf32, #tpu.memory_space<vmem>>, %arg4: memref<8x256xf32, #tpu.memory_space<vmem>>, %arg5: memref<1x8x1xf32, #tpu.memory_space<vmem>>, %arg6: memref<1x8x1xf32, #tpu.memory_space<vmem>>, %arg7: memref<8x128xf32, #tpu.memory_space<vmem>>, %arg8: memref<8x128xf32, #tpu.memory_space<vmem>>) attributes {dimension_semantics = [#tpu.dimension_semantics<parallel>, #tpu.dimension_semantics<parallel>, #tpu.dimension_semantics<arbitrary>], iteration_bounds = array<i64: 1, 1, 1>, scalar_prefetch = 0 : i64, scratch_operands = 2 : i64, tpu.core_type = #tpu.core_type<tc>, window_params = [{transform_indices = @transform_0, window_bounds = array<i64: 8, 256>}, {transform_indices = @transform_1, window_bounds = array<i64: 8, 256>}, {transform_indices = @transform_2, window_bounds = array<i64: 1, 8, 1>}, {transform_indices = @transform_3, window_bounds = array<i64: 1, 8, 1>}]} {
    %c0_i32 = arith.constant 0 : i32
    %0 = arith.cmpi eq, %arg2, %c0_i32 : i32
    %1 = arith.extui %0 : i1 to i32
    %c0_i32_0 = arith.constant 0 : i32
    %2 = arith.cmpi ne, %1, %c0_i32_0 : i32
    scf.if %2 {
      %cst_26 = arith.constant 0.000000e+00 : f32
      %40 = vector.broadcast %cst_26 : f32 to vector<8x128xf32>
      %c0_27 = arith.constant 0 : index
      %c0_28 = arith.constant 0 : index
      %41 = vector.load %arg7[%c0_27, %c0_28] : memref<8x128xf32, #tpu.memory_space<vmem>>, vector<8x128xf32>
      tpu.vector_store %arg7[%c0_27, %c0_28], %40 {strides = array<i32>} : memref<8x128xf32, #tpu.memory_space<vmem>>, vector<8x128xf32>,
      %cst_29 = arith.constant 0.000000e+00 : f32
      %42 = vector.broadcast %cst_29 : f32 to vector<8x128xf32>
      %c0_30 = arith.constant 0 : index
      %c0_31 = arith.constant 0 : index
      %43 = vector.load %arg8[%c0_30, %c0_31] : memref<8x128xf32, #tpu.memory_space<vmem>>, vector<8x128xf32>
      tpu.vector_store %arg8[%c0_30, %c0_31], %42 {strides = array<i32>} : memref<8x128xf32, #tpu.memory_space<vmem>>, vector<8x128xf32>,
    } else {
    }
    %c0 = arith.constant 0 : index
    %c0_1 = arith.constant 0 : index
    %3 = vector.load %arg3[%c0, %c0_1] : memref<8x256xf32, #tpu.memory_space<vmem>>, vector<8x128xf32>
    %c0_2 = arith.constant 0 : index
    %c0_3 = arith.constant 0 : index
    %4 = vector.load %arg4[%c0_2, %c0_3] : memref<8x256xf32, #tpu.memory_space<vmem>>, vector<8x128xf32>
    %5 = arith.negf %3 : vector<8x128xf32>
    %6 = math.exp %5 : vector<8x128xf32>
    %cst = arith.constant 1.000000e+00 : f32
    %7 = vector.broadcast %cst : f32 to vector<8x128xf32>
    %8 = arith.addf %7, %6 : vector<8x128xf32>
    %9 = arith.divf %7, %8 : vector<8x128xf32>
    %c0_4 = arith.constant 0 : index
    %c0_5 = arith.constant 0 : index
    %10 = vector.load %arg7[%c0_4, %c0_5] : memref<8x128xf32, #tpu.memory_space<vmem>>, vector<8x128xf32>
    %11 = arith.mulf %9, %4 : vector<8x128xf32>
    %12 = arith.addf %10, %11 : vector<8x128xf32>
    %c0_6 = arith.constant 0 : index
    %c0_7 = arith.constant 0 : index
    %13 = vector.load %arg7[%c0_6, %c0_7] : memref<8x128xf32, #tpu.memory_space<vmem>>, vector<8x128xf32>
    tpu.vector_store %arg7[%c0_6, %c0_7], %12 {strides = array<i32>} : memref<8x128xf32, #tpu.memory_space<vmem>>, vector<8x128xf32>,
    %c0_8 = arith.constant 0 : index
    %c0_9 = arith.constant 0 : index
    %14 = vector.load %arg8[%c0_8, %c0_9] : memref<8x128xf32, #tpu.memory_space<vmem>>, vector<8x128xf32>
    %15 = arith.mulf %9, %9 : vector<8x128xf32>
    %16 = arith.mulf %4, %4 : vector<8x128xf32>
    %17 = arith.addf %15, %16 : vector<8x128xf32>
    %18 = arith.addf %14, %17 : vector<8x128xf32>
    %c0_10 = arith.constant 0 : index
    %c0_11 = arith.constant 0 : index
    %19 = vector.load %arg8[%c0_10, %c0_11] : memref<8x128xf32, #tpu.memory_space<vmem>>, vector<8x128xf32>
    tpu.vector_store %arg8[%c0_10, %c0_11], %18 {strides = array<i32>} : memref<8x128xf32, #tpu.memory_space<vmem>>, vector<8x128xf32>,
    %c0_12 = arith.constant 0 : index
    %c128 = arith.constant 128 : index
    %20 = vector.load %arg3[%c0_12, %c128] : memref<8x256xf32, #tpu.memory_space<vmem>>, vector<8x128xf32>
    %c0_13 = arith.constant 0 : index
    %c128_14 = arith.constant 128 : index
    %21 = vector.load %arg4[%c0_13, %c128_14] : memref<8x256xf32, #tpu.memory_space<vmem>>, vector<8x128xf32>
    %22 = arith.negf %20 : vector<8x128xf32>
    %23 = math.exp %22 : vector<8x128xf32>
    %cst_15 = arith.constant 1.000000e+00 : f32
    %24 = vector.broadcast %cst_15 : f32 to vector<8x128xf32>
    %25 = arith.addf %24, %23 : vector<8x128xf32>
    %26 = arith.divf %24, %25 : vector<8x128xf32>
    %c0_16 = arith.constant 0 : index
    %c0_17 = arith.constant 0 : index
    %27 = vector.load %arg7[%c0_16, %c0_17] : memref<8x128xf32, #tpu.memory_space<vmem>>, vector<8x128xf32>
    %28 = arith.mulf %26, %21 : vector<8x128xf32>
    %29 = arith.addf %27, %28 : vector<8x128xf32>
    %c0_18 = arith.constant 0 : index
    %c0_19 = arith.constant 0 : index
    %30 = vector.load %arg7[%c0_18, %c0_19] : memref<8x128xf32, #tpu.memory_space<vmem>>, vector<8x128xf32>
    tpu.vector_store %arg7[%c0_18, %c0_19], %29 {strides = array<i32>} : memref<8x128xf32, #tpu.memory_space<vmem>>, vector<8x128xf32>,
    %c0_20 = arith.constant 0 : index
    %c0_21 = arith.constant 0 : index
    %31 = vector.load %arg8[%c0_20, %c0_21] : memref<8x128xf32, #tpu.memory_space<vmem>>, vector<8x128xf32>
    %32 = arith.mulf %26, %26 : vector<8x128xf32>
    %33 = arith.mulf %21, %21 : vector<8x128xf32>
    %34 = arith.addf %32, %33 : vector<8x128xf32>
    %35 = arith.addf %31, %34 : vector<8x128xf32>
    %c0_22 = arith.constant 0 : index
    %c0_23 = arith.constant 0 : index
    %36 = vector.load %arg8[%c0_22, %c0_23] : memref<8x128xf32, #tpu.memory_space<vmem>>, vector<8x128xf32>
    tpu.vector_store %arg8[%c0_22, %c0_23], %35 {strides = array<i32>} : memref<8x128xf32, #tpu.memory_space<vmem>>, vector<8x128xf32>,
    %c0_i32_24 = arith.constant 0 : i32
    %37 = arith.cmpi eq, %arg2, %c0_i32_24 : i32
    %38 = arith.extui %37 : i1 to i32
    %c0_i32_25 = arith.constant 0 : i32
    %39 = arith.cmpi ne, %38, %c0_i32_25 : i32
    scf.if %39 {
      %c0_26 = arith.constant 0 : index
      %c0_27 = arith.constant 0 : index
      %40 = vector.load %arg7[%c0_26, %c0_27] : memref<8x128xf32, #tpu.memory_space<vmem>>, vector<8x128xf32>
      %cst_28 = arith.constant dense<0.000000e+00> : vector<8xf32>
      %41 = vector.multi_reduction <add>, %40, %cst_28 [1] : vector<8x128xf32> to vector<8xf32>
      %42 = vector.shape_cast %41 : vector<8xf32> to vector<8x1xf32>
      %c0_29 = arith.constant 0 : index
      %c0_30 = arith.constant 0 : index
      %c0_31 = arith.constant 0 : index
      %43 = vector.load %arg5[%c0_29, %c0_30, %c0_31] : memref<1x8x1xf32, #tpu.memory_space<vmem>>, vector<1x8x1xf32>
      %44 = vector.shape_cast %43 : vector<1x8x1xf32> to vector<8x1xf32>
      %45 = vector.shape_cast %42 : vector<8x1xf32> to vector<1x8x1xf32>
      tpu.vector_store %arg5[%c0_29, %c0_30, %c0_31], %45 {strides = array<i32>} : memref<1x8x1xf32, #tpu.memory_space<vmem>>, vector<1x8x1xf32>,
      %c0_32 = arith.constant 0 : index
      %c0_33 = arith.constant 0 : index
      %46 = vector.load %arg8[%c0_32, %c0_33] : memref<8x128xf32, #tpu.memory_space<vmem>>, vector<8x128xf32>
      %cst_34 = arith.constant dense<0.000000e+00> : vector<8xf32>
      %47 = vector.multi_reduction <add>, %46, %cst_34 [1] : vector<8x128xf32> to vector<8xf32>
      %48 = vector.shape_cast %47 : vector<8xf32> to vector<8x1xf32>
      %c0_35 = arith.constant 0 : index
      %c0_36 = arith.constant 0 : index
      %c0_37 = arith.constant 0 : index
      %49 = vector.load %arg6[%c0_35, %c0_36, %c0_37] : memref<1x8x1xf32, #tpu.memory_space<vmem>>, vector<1x8x1xf32>
      %50 = vector.shape_cast %49 : vector<1x8x1xf32> to vector<8x1xf32>
      %51 = vector.shape_cast %48 : vector<8x1xf32> to vector<1x8x1xf32>
      tpu.vector_store %arg6[%c0_35, %c0_36, %c0_37], %51 {strides = array<i32>} : memref<1x8x1xf32, #tpu.memory_space<vmem>>, vector<1x8x1xf32>,
    } else {
    }
    return
  }
  func.func @transform_0(%arg0: i32, %arg1: i32, %arg2: i32) -> (i32, i32) {
    %c1_i32 = arith.constant 1 : i32
    %0 = arith.muli %arg0, %c1_i32 : i32
    %1 = arith.addi %0, %arg2 : i32
    %c0_i32 = arith.constant 0 : i32
    return %arg1, %1 : i32, i32
  }
  func.func @transform_1(%arg0: i32, %arg1: i32, %arg2: i32) -> (i32, i32) {
    %c1_i32 = arith.constant 1 : i32
    %0 = arith.muli %arg0, %c1_i32 : i32
    %1 = arith.addi %0, %arg2 : i32
    %c0_i32 = arith.constant 0 : i32
    return %arg1, %1 : i32, i32
  }
  func.func @transform_2(%arg0: i32, %arg1: i32, %arg2: i32) -> (i32, i32, i32) {
    %c0_i32 = arith.constant 0 : i32
    %c0_i32_0 = arith.constant 0 : i32
    return %arg0, %arg1, %c0_i32 : i32, i32, i32
  }
  func.func @transform_3(%arg0: i32, %arg1: i32, %arg2: i32) -> (i32, i32, i32) {
    %c0_i32 = arith.constant 0 : i32
    %c0_i32_0 = arith.constant 0 : i32
    return %arg0, %arg1, %c0_i32 : i32, i32, i32
  }
}

</mosaic_0001>

<bundles_post_ra>
// kernel: _lambda_.1
= control target key start
LH: loop header
LB: loop body
LE: loop exit
PB: predicated region body
PF: predicated region fallthrough
CT: control target
= control target key end

     0   :  { %vm105_vm0 = vcmask 7168   ;;  %s179_s0 = inlined_call_operand.vmem [shape: f32[8,256], index: 0, kind: input, shape index: {}]   ;;  %s180_s1 = inlined_call_operand.vmem [shape: f32[8,256], index: 1, kind: input, shape index: {}]   ;;  %s181_s2 = inlined_call_operand.vmem [shape: f32[1,8,1], index: 2, kind: output, shape index: {0}]   ;;  %s182_s3 = inlined_call_operand.vmem [shape: f32[1,8,1], index: 3, kind: output, shape index: {1}]  }
   0x1   :  { %v63_v0 = vld [vmem:[%s179_s0] sm:$0xff]  ;;  %v81_v1 = vld [vmem:[%s179_s0 + $0x8] sm:$0xff] }
   0x2   :  { %v131_v2 = vmul.f32 -1.442695, %v63_v0  ;;  %v132_v3 = vmul.f32 -1.442695, %v81_v1  ;;  %v64_v8 = vld [vmem:[%s180_s1] sm:$0xff]  ;;  %v82_v10 = vld [vmem:[%s180_s1 + $0x8] sm:$0xff] }
   0x3   :  { %v77_v9 = vmul.f32 %v64_v8, %v64_v8  ;;  %v95_v12 = vmul.f32 %v82_v10, %v82_v10 }
   0x4   :  { %133 = vpow2.f32 %v131_v2 }
   0x5   :  { %135 = vpow2.f32 %v132_v3 }
   0xe   :  { %v134_v4 = vpop.eup %133 }
   0xf   :  { %v136_v5 = vpop.eup %135  ;;  %v68_v6 = vadd.f32 1.0, %v134_v4 }
  0x10   :  { %v86_v7 = vadd.f32 1.0, %v136_v5 }
  0x11   :  { %137 = vrcp.f32 %v68_v6 }
  0x12   :  { %139 = vrcp.f32 %v86_v7 }
  0x1b   :  { %v138_v11 = vpop.eup %137 }
  0x1c   :  { %v140_v13 = vpop.eup %139  ;;  %v72_v14 = vmul.f32 %v138_v11, %v64_v8  ;;  %v76_v15 = vmul.f32 %v138_v11, %v138_v11 }
  0x1d   :  { %v90_v16 = vmul.f32 %v140_v13, %v82_v10  ;;  %v94_v17 = vmul.f32 %v140_v13, %v140_v13 }
  0x1e   :  { %v78_v18 = vadd.f32 %v77_v9, %v76_v15 }
  0x1f   :  { %v91_v19 = vadd.f32 %v90_v16, %v72_v14  ;;  %v96_v20 = vadd.f32 %v95_v12, %v94_v17 }
  0x21   :  { %103 = vadd.xlane.f32.xlu0 %v91_v19  ;;  %v97_v21 = vadd.f32 %v96_v20, %v78_v18 }
  0x25   :  { %108 = vadd.xlane.f32.xlu0 %v97_v21 }
  0xae   :  { %v104_v22 = vpop.xlane.xlu0 %103 }
  0xaf   :  { %106 = vst.msk [vmem:[%s181_s2] sm:$0xff] %vm105_vm0, %v104_v22 }
  0xb2   :  { %v109_v23 = vpop.xlane.xlu0 %108 }
  0xb3   :  { %110 = vst.msk [vmem:[%s182_s3] sm:$0xff] %vm105_vm0, %v109_v23 }

</bundles_post_ra>
